<compile_context>
chip_gen: v5e
topology: v5e:2x2
jax: 0.10.0
libtpu: 0.0.40
codegen_flags: <defaults>
</compile_context>

<pallas_src>
import jax
import jax.numpy as jnp
from jax.experimental import pallas as pl
from jax.experimental.pallas import tpu as pltpu


def mlp_kernel(xt_ref, w1_ref, b1_ref, w2_ref, b2_ref, w3_ref, b3_ref, ot_ref):
    # xt_ref: (2, TB)   batch in lanes
    # w1:(16,2) b1:(16,1) w2:(16,16) b2:(16,1) w3:(10,16) b3:(10,1)
    # ot_ref: (10, TB)

    # Layer 1 (in=2 -> 16) on the VPU: two broadcast multiply-adds.
    xt = xt_ref[...]                                          # (2, TB)
    h1 = (w1_ref[:, 0:1] * xt[0:1, :]
          + w1_ref[:, 1:2] * xt[1:2, :]
          + b1_ref[...])                                      # (16, TB)
    h1 = jnp.maximum(h1, 0.0)

    # Layer 2 (16 -> 16) on the MXU, f32 accumulation.
    h2 = jnp.dot(w2_ref[...], h1, preferred_element_type=jnp.float32)
    h2 = jnp.maximum(h2 + b2_ref[...], 0.0)                   # (16, TB)

    # Output layer (16 -> 10), no activation.
    out = jnp.dot(w3_ref[...], h2, preferred_element_type=jnp.float32)
    ot_ref[...] = (out + b3_ref[...]).astype(ot_ref.dtype)    # (10, TB)


def _pick_batch_tile(B, max_tile):
    """Lane-aligned batch tile; >=2 grid steps when the batch allows it."""
    if B <= 256:
        # Single tile: block lane dim equals the full array dim (always legal).
        return B
    # Split into (at least) two tiles so both v7x TensorCores get work, keep
    # the tile a multiple of 128 lanes (unmasked stores), cap for VMEM.
    half = pl.cdiv(B, 2)
    tb = pl.cdiv(half, 128) * 128
    return int(min(max_tile, tb))


def mlp_forward(x, params, *, max_tile=65536, feature_major_out=False):
    """x: (B, 2) float32, params in torch.nn.Linear layout (W:(out,in), b:(out,)).

    Returns (B, 10) by default (matches the nn.Module); (10, B) when
    feature_major_out=True (skips the extra output-transpose HBM pass).
    """
    w1, b1, w2, b2, w3, b3 = params
    B = x.shape[0]

    TB = _pick_batch_tile(B, max_tile)     # max_tile must be a multiple of 128
    grid = (pl.cdiv(B, TB),)

    # Feature-major input; biases as columns.  (Partial last tile: OOB input
    # columns are undefined but each batch column is independent and the
    # clamped output write drops them, so this is safe.)
    xt = jnp.asarray(x, jnp.float32).T             # (2, B)
    b1c = b1.reshape(-1, 1)
    b2c = b2.reshape(-1, 1)
    b3c = b3.reshape(-1, 1)

    resident = lambda shape: pl.BlockSpec(shape, lambda i: (0, 0))

    # VMEM budget per batch element (f32):
    #   input  (2,TB) double-buffered            : 2 * 2*4  =  16 B
    #   output (10,TB) -> 16 sublanes, dbl-buf   : 2 * 16*4 = 128 B
    #   h1/h2  (16,TB) intermediates             : 2 * 16*4 = 128 B
    per_elem_vmem = 272
    vmem_needed = per_elem_vmem * TB + (2 << 20)   # + weights/headroom
    vmem_limit = int(min(max(2 * vmem_needed, 32 << 20), 48 << 20))

    flops = 2 * B * (2 * 16 + 16 * 16 + 16 * 10)
    bytes_accessed = (B * (2 + 10) * 4
                      + sum(int(a.size) * 4 for a in (w1, b1, w2, b2, w3, b3)))

    out_t = pl.pallas_call(
        mlp_kernel,
        out_shape=jax.ShapeDtypeStruct((10, B), jnp.float32),
        grid=grid,
        in_specs=[
            pl.BlockSpec((2, TB), lambda i: (0, i)),   # x^T: batch tiled into lanes
            resident(w1.shape), resident(b1c.shape),
            resident(w2.shape), resident(b2c.shape),
            resident(w3.shape), resident(b3c.shape),
        ],
        out_specs=pl.BlockSpec((10, TB), lambda i: (0, i)),
        compiler_params=pltpu.CompilerParams(
            dimension_semantics=("parallel",),
            vmem_limit_bytes=vmem_limit),
        cost_estimate=pl.CostEstimate(
            flops=flops, transcendentals=0, bytes_accessed=bytes_accessed),
    )(xt, w1, b1c, w2, b2c, w3, b3c)

    if feature_major_out:
        return out_t                                # (10, B)
    return out_t.T                                  # (B, 10)


def init_params(key):
    """Deterministic init mimicking nn.Linear's uniform(-1/sqrt(fan_in), +).

    Weights kept in torch layout: W is (out_features, in_features), b is (out,).
    """
    ks = jax.random.split(key, 6)

    def linear(kw, kb, fan_in, fan_out):
        bound = 1.0 / jnp.sqrt(float(fan_in))
        w = jax.random.uniform(kw, (fan_out, fan_in), jnp.float32, -bound, bound)
        b = jax.random.uniform(kb, (fan_out,), jnp.float32, -bound, bound)
        return w, b

    w1, b1 = linear(ks[0], ks[1], 2, 16)
    w2, b2 = linear(ks[2], ks[3], 16, 16)
    w3, b3 = linear(ks[4], ks[5], 16, 10)
    return (w1, b1, w2, b2, w3, b3)


if __name__ == "__main__":
    key = jax.random.PRNGKey(0)
    pkey, xkey = jax.random.split(key)
    params = init_params(pkey)
    w1, b1, w2, b2, w3, b3 = params

    def ref_fn(x):
        h = jnp.maximum(x @ w1.T + b1, 0.0)
        h = jnp.maximum(h @ w2.T + b2, 0.0)
        return h @ w3.T + b3

    # Small batch (single-tile path), module input dim is 2.
    x_small = jax.random.normal(xkey, (8, 2), dtype=jnp.float32)
    out_small = mlp_forward(x_small, params)
    jax.block_until_ready(out_small)
    assert out_small.shape == (8, 10)
    assert jnp.allclose(out_small, ref_fn(x_small), atol=1e-5), "mismatch (small)"

    # Multi-tile path: grid=2, lane-aligned tiles, partial last tile.
    x_mid = jax.random.normal(jax.random.PRNGKey(1), (1000, 2), dtype=jnp.float32)
    out_mid = mlp_forward(x_mid, params)
    jax.block_until_ready(out_mid)
    assert out_mid.shape == (1000, 10)
    assert jnp.allclose(out_mid, ref_fn(x_mid), atol=1e-5), "mismatch (tiled)"

    # Feature-major output path (skips the wrapper-side output transpose).
    out_fm = mlp_forward(x_small, params, feature_major_out=True)
    jax.block_until_ready(out_fm)
    assert out_fm.shape == (10, 8)
    assert jnp.allclose(out_fm.T, ref_fn(x_small), atol=1e-5), "mismatch (fm)"

    print("KERNEL_OK")
</pallas_src>

<mosaic_0001>
module attributes {stable_mosaic.version = 11 : i64} {
  func.func @mlp_kernel(%arg0: i32, %arg1: memref<2x8xf32, #tpu.memory_space<vmem>>, %arg2: memref<16x2xf32, #tpu.memory_space<vmem>>, %arg3: memref<16x1xf32, #tpu.memory_space<vmem>>, %arg4: memref<16x16xf32, #tpu.memory_space<vmem>>, %arg5: memref<16x1xf32, #tpu.memory_space<vmem>>, %arg6: memref<10x16xf32, #tpu.memory_space<vmem>>, %arg7: memref<10x1xf32, #tpu.memory_space<vmem>>, %arg8: memref<10x8xf32, #tpu.memory_space<vmem>>) attributes {dimension_semantics = [#tpu.dimension_semantics<parallel>], iteration_bounds = array<i64: 1>, scalar_prefetch = 0 : i64, scratch_operands = 0 : i64, tpu.core_type = #tpu.core_type<tc>, window_params = [{transform_indices = @transform_0, window_bounds = array<i64: 2, 8>}, {pipeline_mode = #tpu.pipeline_mode<synchronous>, transform_indices = @transform_1, window_bounds = array<i64: 16, 2>}, {pipeline_mode = #tpu.pipeline_mode<synchronous>, transform_indices = @transform_2, window_bounds = array<i64: 16, 1>}, {pipeline_mode = #tpu.pipeline_mode<synchronous>, transform_indices = @transform_3, window_bounds = array<i64: 16, 16>}, {pipeline_mode = #tpu.pipeline_mode<synchronous>, transform_indices = @transform_4, window_bounds = array<i64: 16, 1>}, {pipeline_mode = #tpu.pipeline_mode<synchronous>, transform_indices = @transform_5, window_bounds = array<i64: 10, 16>}, {pipeline_mode = #tpu.pipeline_mode<synchronous>, transform_indices = @transform_6, window_bounds = array<i64: 10, 1>}, {transform_indices = @transform_7, window_bounds = array<i64: 10, 8>}]} {
    %c0 = arith.constant 0 : index
    %c0_0 = arith.constant 0 : index
    %0 = vector.load %arg1[%c0, %c0_0] : memref<2x8xf32, #tpu.memory_space<vmem>>, vector<2x8xf32>
    %c0_1 = arith.constant 0 : index
    %c0_2 = arith.constant 0 : index
    %1 = vector.load %arg2[%c0_1, %c0_2] : memref<16x2xf32, #tpu.memory_space<vmem>>, vector<16x1xf32>
    %2 = vector.extract_strided_slice %0 {offsets = [0, 0], sizes = [1, 8], strides = [1, 1]} : vector<2x8xf32> to vector<1x8xf32>
    %3 = vector.broadcast %1 : vector<16x1xf32> to vector<16x8xf32>
    %4 = vector.broadcast %2 : vector<1x8xf32> to vector<16x8xf32>
    %5 = arith.mulf %3, %4 : vector<16x8xf32>
    %c0_3 = arith.constant 0 : index
    %c1 = arith.constant 1 : index
    %6 = vector.load %arg2[%c0_3, %c1] : memref<16x2xf32, #tpu.memory_space<vmem>>, vector<16x1xf32>
    %7 = vector.extract_strided_slice %0 {offsets = [1, 0], sizes = [1, 8], strides = [1, 1]} : vector<2x8xf32> to vector<1x8xf32>
    %8 = vector.broadcast %6 : vector<16x1xf32> to vector<16x8xf32>
    %9 = vector.broadcast %7 : vector<1x8xf32> to vector<16x8xf32>
    %10 = arith.mulf %8, %9 : vector<16x8xf32>
    %11 = arith.addf %5, %10 : vector<16x8xf32>
    %c0_4 = arith.constant 0 : index
    %c0_5 = arith.constant 0 : index
    %12 = vector.load %arg3[%c0_4, %c0_5] : memref<16x1xf32, #tpu.memory_space<vmem>>, vector<16x1xf32>
    %13 = vector.broadcast %12 : vector<16x1xf32> to vector<16x8xf32>
    %14 = arith.addf %11, %13 : vector<16x8xf32>
    %cst = arith.constant 0.000000e+00 : f32
    %15 = vector.broadcast %cst : f32 to vector<16x8xf32>
    %16 = arith.maximumf %14, %15 : vector<16x8xf32>
    %c0_6 = arith.constant 0 : index
    %c0_7 = arith.constant 0 : index
    %17 = vector.load %arg4[%c0_6, %c0_7] : memref<16x16xf32, #tpu.memory_space<vmem>>, vector<16x16xf32>
    %cst_8 = arith.constant dense<0.000000e+00> : vector<16x8xf32>
    %18 = tpu.matmul %17, %16, %cst_8 {dimension_numbers = #tpu.dot_dimension_numbers<[1], [0], [0], [1], [0, 0, 1, 1], [], []>} : vector<16x16xf32>, vector<16x8xf32>, vector<16x8xf32> -> vector<16x8xf32>
    %c0_9 = arith.constant 0 : index
    %c0_10 = arith.constant 0 : index
    %19 = vector.load %arg5[%c0_9, %c0_10] : memref<16x1xf32, #tpu.memory_space<vmem>>, vector<16x1xf32>
    %20 = vector.broadcast %19 : vector<16x1xf32> to vector<16x8xf32>
    %21 = arith.addf %18, %20 : vector<16x8xf32>
    %cst_11 = arith.constant 0.000000e+00 : f32
    %22 = vector.broadcast %cst_11 : f32 to vector<16x8xf32>
    %23 = arith.maximumf %21, %22 : vector<16x8xf32>
    %c0_12 = arith.constant 0 : index
    %c0_13 = arith.constant 0 : index
    %24 = vector.load %arg6[%c0_12, %c0_13] : memref<10x16xf32, #tpu.memory_space<vmem>>, vector<10x16xf32>
    %cst_14 = arith.constant dense<0.000000e+00> : vector<10x8xf32>
    %25 = tpu.matmul %24, %23, %cst_14 {dimension_numbers = #tpu.dot_dimension_numbers<[1], [0], [0], [1], [0, 0, 1, 1], [], []>} : vector<10x16xf32>, vector<16x8xf32>, vector<10x8xf32> -> vector<10x8xf32>
    %c0_15 = arith.constant 0 : index
    %c0_16 = arith.constant 0 : index
    %26 = vector.load %arg7[%c0_15, %c0_16] : memref<10x1xf32, #tpu.memory_space<vmem>>, vector<10x1xf32>
    %27 = vector.broadcast %26 : vector<10x1xf32> to vector<10x8xf32>
    %28 = arith.addf %25, %27 : vector<10x8xf32>
    %c0_17 = arith.constant 0 : index
    %c0_18 = arith.constant 0 : index
    %29 = vector.load %arg8[%c0_17, %c0_18] : memref<10x8xf32, #tpu.memory_space<vmem>>, vector<10x8xf32>
    tpu.vector_store %arg8[%c0_17, %c0_18], %28 {strides = array<i32>} : memref<10x8xf32, #tpu.memory_space<vmem>>, vector<10x8xf32>,
    return
  }
  func.func @transform_0(%arg0: i32) -> (i32, i32) {
    %c0_i32 = arith.constant 0 : i32
    %c0_i32_0 = arith.constant 0 : i32
    return %c0_i32, %arg0 : i32, i32
  }
  func.func @transform_1(%arg0: i32) -> (i32, i32) {
    %c0_i32 = arith.constant 0 : i32
    %c0_i32_0 = arith.constant 0 : i32
    %c0_i32_1 = arith.constant 0 : i32
    return %c0_i32, %c0_i32_0 : i32, i32
  }
  func.func @transform_2(%arg0: i32) -> (i32, i32) {
    %c0_i32 = arith.constant 0 : i32
    %c0_i32_0 = arith.constant 0 : i32
    %c0_i32_1 = arith.constant 0 : i32
    return %c0_i32, %c0_i32_0 : i32, i32
  }
  func.func @transform_3(%arg0: i32) -> (i32, i32) {
    %c0_i32 = arith.constant 0 : i32
    %c0_i32_0 = arith.constant 0 : i32
    %c0_i32_1 = arith.constant 0 : i32
    return %c0_i32, %c0_i32_0 : i32, i32
  }
  func.func @transform_4(%arg0: i32) -> (i32, i32) {
    %c0_i32 = arith.constant 0 : i32
    %c0_i32_0 = arith.constant 0 : i32
    %c0_i32_1 = arith.constant 0 : i32
    return %c0_i32, %c0_i32_0 : i32, i32
  }
  func.func @transform_5(%arg0: i32) -> (i32, i32) {
    %c0_i32 = arith.constant 0 : i32
    %c0_i32_0 = arith.constant 0 : i32
    %c0_i32_1 = arith.constant 0 : i32
    return %c0_i32, %c0_i32_0 : i32, i32
  }
  func.func @transform_6(%arg0: i32) -> (i32, i32) {
    %c0_i32 = arith.constant 0 : i32
    %c0_i32_0 = arith.constant 0 : i32
    %c0_i32_1 = arith.constant 0 : i32
    return %c0_i32, %c0_i32_0 : i32, i32
  }
  func.func @transform_7(%arg0: i32) -> (i32, i32) {
    %c0_i32 = arith.constant 0 : i32
    %c0_i32_0 = arith.constant 0 : i32
    return %c0_i32, %arg0 : i32, i32
  }
}

</mosaic_0001>

<bundles_post_ra>
// kernel: tpu_custom_call.1
= control target key start
LH: loop header
LB: loop body
LE: loop exit
PB: predicated region body
PF: predicated region fallthrough
CT: control target
= control target key end

     0   :  { %v185_v0 = vmov 0   ;;  %v186_v5 = vmov 1   ;;  %vm85_vm0 = vcmask 130048   ;;  %vm160_vm1 = vcmask 64512   ;;  %s276_s1 = inlined_call_operand.vmem [shape: f32[16,2], index: 1, kind: input, shape index: {}]   ;;  %s277_s2 = inlined_call_operand.vmem [shape: f32[16,1], index: 2, kind: input, shape index: {}]   ;;  %s278_s4 = inlined_call_operand.vmem [shape: f32[16,1], index: 4, kind: input, shape index: {}]   ;;  %s279_s6 = inlined_call_operand.vmem [shape: f32[10,1], index: 6, kind: input, shape index: {}]   ;;  %s280_s0 = inlined_call_operand.vmem [shape: f32[2,8], index: 0, kind: input, shape index: {}]   ;;  %s281_s3 = inlined_call_operand.vmem [shape: f32[16,16], index: 3, kind: input, shape index: {}]   ;;  %s282_s5 = inlined_call_operand.vmem [shape: f32[10,16], index: 5, kind: input, shape index: {}]   ;;  %s283_s7 = inlined_call_operand.vmem [shape: f32[10,8], index: 7, kind: output, shape index: {}]  }
   0x1   :  { %180 = vset.pattern.permute.xlu1 %v185_v0  ;;  %178 = vset.pattern.permute.xlu0 %v185_v0  ;;  %v28_v1 = vld [vmem:[%s276_s1 + $0x8] sm:$0xff]  ;;  %v27_v2 = vld [vmem:[%s276_s1] sm:$0xff]  ;;  %vm162_vm2 = vcmask 58368  }
   0x2   :  { %v56_v3 = vld [vmem:[%s277_s2 + $0x8] sm:$0xff]  ;;  %36 = vperm.xlu0 %178, %v28_v1   ;;  %31 = vperm.xlu1 %180, %v27_v2   ;;  %v55_v4 = vld [vmem:[%s277_s2] sm:$0xff] }
   0x3   :  { %182 = vset.pattern.permute.xlu2 %v185_v0  ;;  %v73_v6 = vld [vmem:[%s278_s4] sm:$0xff]  ;;  %v74_v7 = vld [vmem:[%s278_s4 + $0x8] sm:$0xff] }
   0x4   :  { %64 = vperm.xlu2 %182, %v56_v3   ;;  %v120_v8 = vld [vmem:[%s279_s6 + $0x8] sm:$0x3]  ;;  %v26_v12 = vld [vmem:[%s280_s0] sm:$0x3] }
   0x5   :  { %v39_v13 = vperm.slane %v26_v12, 0  ;;  %v50_v14 = vperm.slane %v26_v12, 1  ;;  %v71_v28 = vld [vmem:[%s281_s3] sm:$0xff]  ;;  %v72_v29 = vld [vmem:[%s281_s3 + $0x8] sm:$0xff] }
   0x6   :  { %v119_v30 = vld [vmem:[%s279_s6] sm:$0xff]  ;;  %v118_v39 = vld [vmem:[%s282_s5 + $0x8] sm:$0x3] }
   0x7   :  { %v117_v40 = vld [vmem:[%s282_s5] sm:$0xff] }
   0xa   :  { %179 = vset.pattern.permute.xlu0 %v186_v5  ;;  %181 = vset.pattern.permute.xlu1 %v186_v5 }
   0xb   :  { %47 = vperm.xlu0 %179, %v28_v1   ;;  %43 = vperm.xlu1 %181, %v27_v2  }
   0xc   :  { %59 = vperm.xlu2 %182, %v55_v4  }
  0x13   :  { %183 = vset.pattern.permute.xlu1 %v185_v0  ;;  %184 = vset.pattern.permute.xlu0 %v185_v0 }
  0x14   :  { %77 = vperm.xlu2 %182, %v73_v6   ;;  %82 = vperm.xlu1 %183, %v74_v7  }
  0x15   :  { %123 = vperm.xlu0 %184, %v119_v30  }
  0x1c   :  { %128 = vperm.xlu1 %183, %v120_v8  }
  0x5e   :  { %v65_v11 = vpop.permute.xlu2 %64 }
  0x66   :  { %v60_v23 = vpop.permute.xlu2 %59 }
  0x6e   :  { %v78_v32 = vpop.permute.xlu2 %77 }
  0x74   :  { %v37_v9 = vpop.permute.xlu0 %36  ;;  %v32_v10 = vpop.permute.xlu1 %31 }
  0x75   :  { %v41_v17 = vmul.f32 %v39_v13, %v37_v9  ;;  %v40_v18 = vmul.f32 %v39_v13, %v32_v10 }
  0x7d   :  { %v48_v15 = vpop.permute.xlu0 %47  ;;  %v44_v16 = vpop.permute.xlu1 %43 }
  0x7e   :  { %v52_v19 = vmul.f32 %v50_v14, %v48_v15  ;;  %v51_v20 = vmul.f32 %v50_v14, %v44_v16 }
  0x80   :  { %v54_v21 = vadd.f32 %v52_v19, %v41_v17  ;;  %v53_v22 = vadd.f32 %v51_v20, %v40_v18 }
  0x82   :  { %v68_v24 = vadd.f32 %v65_v11, %v54_v21  ;;  %v67_v25 = vadd.f32 %v60_v23, %v53_v22 }
  0x84   :  { %v70_v26 = vmax.f32 %v68_v24, 0.0  ;;  %v69_v27 = vmax.f32 %v67_v25, 0.0 }
  0x86   :  { %106 = vmatpush.msra.mxu0 %v70_v26  ;;  %172 = vmatpush.msra.mxu2 %v70_v26  ;;  %v83_v33 = vpop.permute.xlu1 %82 }
  0x87   :  { %v124_v41 = vpop.permute.xlu0 %123 }
  0x88   :  { %107 = vmatpush.msra.mxu0 %v69_v27  ;;  %173 = vmatpush.msra.mxu2 %v69_v27 }
  0x89   :  { %168 = vmatmul.msk.f32.vlgmr.msra.gmra.mxu0 %vm85_vm0, %v71_v28  ;;  %169 = vmatmul.msk.f32.vlgmr.msra.gmra.mxu2 %vm85_vm0, %v72_v29 }
  0x8e   :  { %v129_v44 = vpop.permute.xlu1 %128 }
 0x106   :  { %v109_v31 = vpop.f32.mrf.mxu0 }
 0x107   :  { %v110_v35 = vadd.f32 %v109_v31, %v78_v32 }
 0x109   :  { %v115_v38 = vmax.f32 %v110_v35, 0.0 }
 0x10c   :  { %v112_v34 = vpop.f32.mrf.mxu2 }
 0x10d   :  { %v113_v36 = vadd.f32 %v112_v34, %v83_v33 }
 0x10f   :  { %v116_v37 = vmax.f32 %v113_v36, 0.0 }
 0x111   :  { %151 = vmatpush.msra.mxu1 %v116_v37  ;;  %174 = vmatpush.msra.mxu3 %v116_v37 }
 0x113   :  { %152 = vmatpush.msra.mxu1 %v115_v38  ;;  %175 = vmatpush.msra.mxu3 %v115_v38 }
 0x114   :  { %171 = vmatmul.msk.f32.vlgmr.msra.gmra.mxu3 %vm85_vm0, %v118_v39  ;;  %170 = vmatmul.msk.f32.vlgmr.msra.gmra.mxu1 %vm85_vm0, %v117_v40 }
 0x191   :  { %v154_v42 = vpop.f32.mrf.mxu1 }
 0x192   :  { %v155_v43 = vadd.f32 %v154_v42, %v124_v41 }
 0x194   :  { %161 = vst.msk [vmem:[%s283_s7] sm:$0xff] %vm160_vm1, %v155_v43 }
 0x197   :  { %v157_v45 = vpop.f32.mrf.mxu3 }
 0x198   :  { %v158_v46 = vadd.f32 %v157_v45, %v129_v44 }
 0x19a   :  { %163 = vst.msk [vmem:[%s283_s7 + $0x8] sm:$0x3] %vm162_vm2, %v158_v46 }

</bundles_post_ra>
